<compile_context>
chip_gen: v7x
topology: tpu7x:2x2x1
jax: 0.10.0
libtpu: 0.0.40
codegen_flags: <defaults>
</compile_context>

<pallas_src>
import functools
import math

import jax
import jax.numpy as jnp
from jax.experimental import pallas as pl
from jax.experimental.pallas import tpu as pltpu


def attn_kernel(xq_ref, xkv_ref, wq_ref, wk_ref, wv_ref,
                bq_ref, bk_ref, bv_ref, wp_ref, bp_ref,
                o_ref, k_scratch, v_scratch, *, n_head):
    # xq_ref:  (1, tq, C)  query-tile slice of x
    # xkv_ref: (1, T,  C)  full-sequence x (constant across the query axis)
    # wq/wk/wv_ref: (C, C) pre-transposed projection weights (Wq^T pre-scaled)
    # bq/bk/bv_ref: (1, C) biases (bq pre-scaled)
    # wp_ref: (C, C)  Wproj^T ;  bp_ref: (1, C)
    # o_ref:  (1, tq, C)
    # k_scratch / v_scratch: (T, C) f32 VMEM, persistent across query tiles
    tq = xq_ref.shape[1]
    T, C = k_scratch.shape
    hs = C // n_head
    qi = pl.program_id(1)

    # Compute K and V for the whole sequence once per batch element.
    @pl.when(qi == 0)
    def _():
        xkv = xkv_ref[0]                                            # (T, C)
        k_scratch[...] = jnp.dot(xkv, wk_ref[...],
                                 preferred_element_type=jnp.float32) + bk_ref[...]
        v_scratch[...] = jnp.dot(xkv, wv_ref[...],
                                 preferred_element_type=jnp.float32) + bv_ref[...]

    xq = xq_ref[0]                                                  # (tq, C)
    # Scale already folded into wq/bq on the host.
    q = jnp.dot(xq, wq_ref[...],
                preferred_element_type=jnp.float32) + bq_ref[...]   # (tq, C)
    k = k_scratch[...]                                              # (T, C)
    v = v_scratch[...]                                              # (T, C)

    # Causal mask for this query tile (global row index = qi*tq + local row).
    q_start = qi * tq
    row = jax.lax.broadcasted_iota(jnp.int32, (tq, T), 0) + q_start
    col = jax.lax.broadcasted_iota(jnp.int32, (tq, T), 1)
    causal = col <= row                                             # hoisted
    neg_big = jnp.float32(-1e30)  # finite mask; exp underflows to exactly 0

    # Accumulate every head directly through its slice of Wproj^T.
    # TODO(synk): pack >=2 heads per MXU pass (block-diagonal K/V or batched
    #             dot) so the hs-wide PV/QK matmuls fill the 256-wide MXU.
    acc = jnp.zeros((tq, C), jnp.float32)
    for h in range(n_head):
        lo, hi = h * hs, (h + 1) * hs
        qh = q[:, lo:hi]                                            # (tq, hs)
        kh = k[:, lo:hi]                                            # (T,  hs)
        vh = v[:, lo:hi]                                            # (T,  hs)

        # Q @ K^T without materializing a transpose of K.
        att = jax.lax.dot_general(qh, kh, (((1,), (1,)), ((), ())),
                                  preferred_element_type=jnp.float32)  # (tq, T)
        att = jnp.where(causal, att, neg_big)
        m = jnp.max(att, axis=-1, keepdims=True)
        p = jnp.exp(att - m)                                        # unnormalized
        s = jnp.sum(p, axis=-1, keepdims=True)

        yh = jnp.dot(p, vh, preferred_element_type=jnp.float32)     # (tq, hs)
        yh = yh * pl.reciprocal(s, approx=False)                    # normalize small tensor

        acc = acc + jnp.dot(yh, wp_ref[lo:hi, :],
                            preferred_element_type=jnp.float32)     # (tq, C)

    o_ref[0] = (acc + bp_ref[...]).astype(o_ref.dtype)


def causal_self_attention(x, w_attn, b_attn, w_proj, b_proj, *, n_head,
                          q_tile=256):
    """x: (B,T,C); w_attn: (3C,C); b_attn: (3C,); w_proj: (C,C); b_proj: (C,)."""
    B, T, C = x.shape
    hs = C // n_head
    scale = 1.0 / math.sqrt(hs)

    # Host-side weight prep: split qkv projection, pre-transpose to (in, out),
    # and fold the attention scale into the Q projection.
    wq_t = w_attn[0:C, :].T * scale
    wk_t = w_attn[C:2 * C, :].T
    wv_t = w_attn[2 * C:3 * C, :].T
    bq = (b_attn[0:C] * scale).reshape(1, C)
    bk = b_attn[C:2 * C].reshape(1, C)
    bv = b_attn[2 * C:3 * C].reshape(1, C)
    wp_t = w_proj.T
    bp = b_proj.reshape(1, C)

    # Query-tile size: full T if small, otherwise a sublane-aligned tile.
    if T <= q_tile:
        tq = T
    else:
        assert T % q_tile == 0, "T must be divisible by q_tile"
        tq = q_tile
    nq = T // tq

    kernel = functools.partial(attn_kernel, n_head=n_head)

    # TODO(synk): mark weight/bias BlockSpecs single-buffered
    #             (pipeline_mode=pl.Buffered(1)) once that path is exercised;
    #             their index_map is constant so double-buffering is wasted VMEM.
    return pl.pallas_call(
        kernel,
        out_shape=jax.ShapeDtypeStruct((B, T, C), x.dtype),
        grid=(B, nq),
        in_specs=[
            pl.BlockSpec((1, tq, C), lambda b, qi: (b, qi, 0)),   # x (query tile)
            pl.BlockSpec((1, T, C), lambda b, qi: (b, 0, 0)),     # x (full, for K/V)
            pl.BlockSpec((C, C), lambda b, qi: (0, 0)),           # Wq^T (pre-scaled)
            pl.BlockSpec((C, C), lambda b, qi: (0, 0)),           # Wk^T
            pl.BlockSpec((C, C), lambda b, qi: (0, 0)),           # Wv^T
            pl.BlockSpec((1, C), lambda b, qi: (0, 0)),           # bq (pre-scaled)
            pl.BlockSpec((1, C), lambda b, qi: (0, 0)),           # bk
            pl.BlockSpec((1, C), lambda b, qi: (0, 0)),           # bv
            pl.BlockSpec((C, C), lambda b, qi: (0, 0)),           # Wproj^T
            pl.BlockSpec((1, C), lambda b, qi: (0, 0)),           # bproj
        ],
        out_specs=pl.BlockSpec((1, tq, C), lambda b, qi: (b, qi, 0)),
        scratch_shapes=[
            pltpu.VMEM((T, C), jnp.float32),   # K for current batch element
            pltpu.VMEM((T, C), jnp.float32),   # V for current batch element
        ],
        compiler_params=pltpu.CompilerParams(
            dimension_semantics=("parallel", "arbitrary")),
    )(x, x, wq_t, wk_t, wv_t, bq, bk, bv, wp_t, bp)


def reference(x, w_attn, b_attn, w_proj, b_proj, n_head):
    # Pure-JAX reference mirroring the PyTorch forward.
    B, T, C = x.shape
    hs = C // n_head
    qkv = x @ w_attn.T + b_attn
    q, k, v = jnp.split(qkv, 3, axis=2)
    q = q.reshape(B, T, n_head, hs).transpose(0, 2, 1, 3)
    k = k.reshape(B, T, n_head, hs).transpose(0, 2, 1, 3)
    v = v.reshape(B, T, n_head, hs).transpose(0, 2, 1, 3)
    att = jnp.einsum("bhqd,bhkd->bhqk", q, k) / math.sqrt(hs)
    mask = jnp.tril(jnp.ones((T, T), bool))
    att = jnp.where(mask, att, -jnp.inf)
    att = jax.nn.softmax(att, axis=-1)
    y = jnp.einsum("bhqk,bhkd->bhqd", att, v)
    y = y.transpose(0, 2, 1, 3).reshape(B, T, C)
    return y @ w_proj.T + b_proj


if __name__ == "__main__":
    # Small config consistent with the module: n_embed % n_head == 0
    B, T, C, n_head = 2, 8, 32, 4

    key = jax.random.PRNGKey(0)
    kx, k1, k2, k3, k4 = jax.random.split(key, 5)

    x = jax.random.normal(kx, (B, T, C), dtype=jnp.float32)

    # Deterministic PyTorch-Linear-style init: U(-1/sqrt(in), 1/sqrt(in))
    bound = 1.0 / math.sqrt(C)
    w_attn = jax.random.uniform(k1, (3 * C, C), jnp.float32, -bound, bound)
    b_attn = jax.random.uniform(k2, (3 * C,), jnp.float32, -bound, bound)
    w_proj = jax.random.uniform(k3, (C, C), jnp.float32, -bound, bound)
    b_proj = jax.random.uniform(k4, (C,), jnp.float32, -bound, bound)

    out = causal_self_attention(x, w_attn, b_attn, w_proj, b_proj,
                                n_head=n_head)
    out = jax.block_until_ready(out)

    ref = reference(x, w_attn, b_attn, w_proj, b_proj, n_head)
    assert out.shape == (B, T, C)
    assert jnp.allclose(out, ref, atol=1e-4, rtol=1e-4), "mismatch vs reference"

    print("KERNEL_OK")
</pallas_src>

<mosaic_0001>
module attributes {stable_mosaic.version = 11 : i64} {
  func.func @attn_kernel(%arg0: i32, %arg1: i32, %arg2: memref<1x8x32xf32, #tpu.memory_space<vmem>>, %arg3: memref<1x8x32xf32, #tpu.memory_space<vmem>>, %arg4: memref<32x32xf32, #tpu.memory_space<vmem>>, %arg5: memref<32x32xf32, #tpu.memory_space<vmem>>, %arg6: memref<32x32xf32, #tpu.memory_space<vmem>>, %arg7: memref<1x32xf32, #tpu.memory_space<vmem>>, %arg8: memref<1x32xf32, #tpu.memory_space<vmem>>, %arg9: memref<1x32xf32, #tpu.memory_space<vmem>>, %arg10: memref<32x32xf32, #tpu.memory_space<vmem>>, %arg11: memref<1x32xf32, #tpu.memory_space<vmem>>, %arg12: memref<1x8x32xf32, #tpu.memory_space<vmem>>, %arg13: memref<8x32xf32, #tpu.memory_space<vmem>>, %arg14: memref<8x32xf32, #tpu.memory_space<vmem>>) attributes {dimension_semantics = [#tpu.dimension_semantics<parallel>, #tpu.dimension_semantics<arbitrary>], iteration_bounds = array<i64: 2, 1>, scalar_prefetch = 0 : i64, scratch_operands = 2 : i64, tpu.core_type = #tpu.core_type<tc>, window_params = [{transform_indices = @transform_0, window_bounds = array<i64: 1, 8, 32>}, {transform_indices = @transform_1, window_bounds = array<i64: 1, 8, 32>}, {pipeline_mode = #tpu.pipeline_mode<synchronous>, transform_indices = @transform_2, window_bounds = array<i64: 32, 32>}, {pipeline_mode = #tpu.pipeline_mode<synchronous>, transform_indices = @transform_3, window_bounds = array<i64: 32, 32>}, {pipeline_mode = #tpu.pipeline_mode<synchronous>, transform_indices = @transform_4, window_bounds = array<i64: 32, 32>}, {pipeline_mode = #tpu.pipeline_mode<synchronous>, transform_indices = @transform_5, window_bounds = array<i64: 1, 32>}, {pipeline_mode = #tpu.pipeline_mode<synchronous>, transform_indices = @transform_6, window_bounds = array<i64: 1, 32>}, {pipeline_mode = #tpu.pipeline_mode<synchronous>, transform_indices = @transform_7, window_bounds = array<i64: 1, 32>}, {pipeline_mode = #tpu.pipeline_mode<synchronous>, transform_indices = @transform_8, window_bounds = array<i64: 32, 32>}, {pipeline_mode = #tpu.pipeline_mode<synchronous>, transform_indices = @transform_9, window_bounds = array<i64: 1, 32>}, {transform_indices = @transform_10, window_bounds = array<i64: 1, 8, 32>}]} {
    %c0_i32 = arith.constant 0 : i32
    %0 = arith.cmpi eq, %arg1, %c0_i32 : i32
    %1 = arith.extui %0 : i1 to i32
    %c0_i32_0 = arith.constant 0 : i32
    %2 = arith.cmpi ne, %1, %c0_i32_0 : i32
    scf.if %2 {
      %c0_46 = arith.constant 0 : index
      %c0_47 = arith.constant 0 : index
      %c0_48 = arith.constant 0 : index
      %105 = vector.load %arg3[%c0_46, %c0_47, %c0_48] : memref<1x8x32xf32, #tpu.memory_space<vmem>>, vector<1x8x32xf32>
      %106 = vector.shape_cast %105 : vector<1x8x32xf32> to vector<8x32xf32>
      %c0_49 = arith.constant 0 : index
      %c0_50 = arith.constant 0 : index
      %107 = vector.load %arg5[%c0_49, %c0_50] : memref<32x32xf32, #tpu.memory_space<vmem>>, vector<32x32xf32>
      %cst_51 = arith.constant dense<0.000000e+00> : vector<8x32xf32>
      %108 = tpu.matmul %106, %107, %cst_51 {dimension_numbers = #tpu.dot_dimension_numbers<[1], [0], [0], [1], [0, 0, 1, 1], [], []>} : vector<8x32xf32>, vector<32x32xf32>, vector<8x32xf32> -> vector<8x32xf32>
      %c0_52 = arith.constant 0 : index
      %c0_53 = arith.constant 0 : index
      %109 = vector.load %arg8[%c0_52, %c0_53] : memref<1x32xf32, #tpu.memory_space<vmem>>, vector<1x32xf32>
      %110 = vector.broadcast %109 : vector<1x32xf32> to vector<8x32xf32>
      %111 = arith.addf %108, %110 : vector<8x32xf32>
      %c0_54 = arith.constant 0 : index
      %c0_55 = arith.constant 0 : index
      %112 = vector.load %arg13[%c0_54, %c0_55] : memref<8x32xf32, #tpu.memory_space<vmem>>, vector<8x32xf32>
      tpu.vector_store %arg13[%c0_54, %c0_55], %111 {strides = array<i32>} : memref<8x32xf32, #tpu.memory_space<vmem>>, vector<8x32xf32>,
      %c0_56 = arith.constant 0 : index
      %c0_57 = arith.constant 0 : index
      %113 = vector.load %arg6[%c0_56, %c0_57] : memref<32x32xf32, #tpu.memory_space<vmem>>, vector<32x32xf32>
      %cst_58 = arith.constant dense<0.000000e+00> : vector<8x32xf32>
      %114 = tpu.matmul %106, %113, %cst_58 {dimension_numbers = #tpu.dot_dimension_numbers<[1], [0], [0], [1], [0, 0, 1, 1], [], []>} : vector<8x32xf32>, vector<32x32xf32>, vector<8x32xf32> -> vector<8x32xf32>
      %c0_59 = arith.constant 0 : index
      %c0_60 = arith.constant 0 : index
      %115 = vector.load %arg9[%c0_59, %c0_60] : memref<1x32xf32, #tpu.memory_space<vmem>>, vector<1x32xf32>
      %116 = vector.broadcast %115 : vector<1x32xf32> to vector<8x32xf32>
      %117 = arith.addf %114, %116 : vector<8x32xf32>
      %c0_61 = arith.constant 0 : index
      %c0_62 = arith.constant 0 : index
      %118 = vector.load %arg14[%c0_61, %c0_62] : memref<8x32xf32, #tpu.memory_space<vmem>>, vector<8x32xf32>
      tpu.vector_store %arg14[%c0_61, %c0_62], %117 {strides = array<i32>} : memref<8x32xf32, #tpu.memory_space<vmem>>, vector<8x32xf32>,
    } else {
    }
    %c0 = arith.constant 0 : index
    %c0_1 = arith.constant 0 : index
    %c0_2 = arith.constant 0 : index
    %3 = vector.load %arg2[%c0, %c0_1, %c0_2] : memref<1x8x32xf32, #tpu.memory_space<vmem>>, vector<1x8x32xf32>
    %4 = vector.shape_cast %3 : vector<1x8x32xf32> to vector<8x32xf32>
    %c0_3 = arith.constant 0 : index
    %c0_4 = arith.constant 0 : index
    %5 = vector.load %arg4[%c0_3, %c0_4] : memref<32x32xf32, #tpu.memory_space<vmem>>, vector<32x32xf32>
    %cst = arith.constant dense<0.000000e+00> : vector<8x32xf32>
    %6 = tpu.matmul %4, %5, %cst {dimension_numbers = #tpu.dot_dimension_numbers<[1], [0], [0], [1], [0, 0, 1, 1], [], []>} : vector<8x32xf32>, vector<32x32xf32>, vector<8x32xf32> -> vector<8x32xf32>
    %c0_5 = arith.constant 0 : index
    %c0_6 = arith.constant 0 : index
    %7 = vector.load %arg7[%c0_5, %c0_6] : memref<1x32xf32, #tpu.memory_space<vmem>>, vector<1x32xf32>
    %8 = vector.broadcast %7 : vector<1x32xf32> to vector<8x32xf32>
    %9 = arith.addf %6, %8 : vector<8x32xf32>
    %c0_7 = arith.constant 0 : index
    %c0_8 = arith.constant 0 : index
    %10 = vector.load %arg13[%c0_7, %c0_8] : memref<8x32xf32, #tpu.memory_space<vmem>>, vector<8x32xf32>
    %c0_9 = arith.constant 0 : index
    %c0_10 = arith.constant 0 : index
    %11 = vector.load %arg14[%c0_9, %c0_10] : memref<8x32xf32, #tpu.memory_space<vmem>>, vector<8x32xf32>
    %c8_i32 = arith.constant 8 : i32
    %12 = arith.muli %arg1, %c8_i32 : i32
    %13 = tpu.iota {dimensions = array<i32: 0>} : vector<8x8xi32>
    %14 = vector.broadcast %12 : i32 to vector<8x8xi32>
    %15 = arith.addi %13, %14 : vector<8x8xi32>
    %16 = tpu.iota {dimensions = array<i32: 1>} : vector<8x8xi32>
    %17 = arith.cmpi sle, %16, %15 : vector<8x8xi32>
    %cst_11 = arith.constant 0.000000e+00 : f32
    %18 = vector.broadcast %cst_11 : f32 to vector<8x32xf32>
    %19 = vector.extract_strided_slice %9 {offsets = [0, 0], sizes = [8, 8], strides = [1, 1]} : vector<8x32xf32> to vector<8x8xf32>
    %20 = vector.extract_strided_slice %10 {offsets = [0, 0], sizes = [8, 8], strides = [1, 1]} : vector<8x32xf32> to vector<8x8xf32>
    %21 = vector.extract_strided_slice %11 {offsets = [0, 0], sizes = [8, 8], strides = [1, 1]} : vector<8x32xf32> to vector<8x8xf32>
    %cst_12 = arith.constant dense<0.000000e+00> : vector<8x8xf32>
    %22 = tpu.matmul %19, %20, %cst_12 {dimension_numbers = #tpu.dot_dimension_numbers<[1], [1], [0], [0], [0, 0, 1, 0], [], []>} : vector<8x8xf32>, vector<8x8xf32>, vector<8x8xf32> -> vector<8x8xf32>
    %cst_13 = arith.constant -1.000000e+30 : f32
    %23 = vector.broadcast %cst_13 : f32 to vector<8x8xf32>
    %24 = arith.select %17, %22, %23 : vector<8x8xi1>, vector<8x8xf32>
    %cst_14 = arith.constant dense<0xFF800000> : vector<8xf32>
    %25 = vector.multi_reduction <maximumf>, %24, %cst_14 [1] : vector<8x8xf32> to vector<8xf32>
    %26 = vector.shape_cast %25 : vector<8xf32> to vector<8x1xf32>
    %27 = vector.broadcast %26 : vector<8x1xf32> to vector<8x8xf32>
    %28 = arith.subf %24, %27 : vector<8x8xf32>
    %29 = math.exp %28 : vector<8x8xf32>
    %cst_15 = arith.constant dense<0.000000e+00> : vector<8xf32>
    %30 = vector.multi_reduction <add>, %29, %cst_15 [1] : vector<8x8xf32> to vector<8xf32>
    %31 = vector.shape_cast %30 : vector<8xf32> to vector<8x1xf32>
    %cst_16 = arith.constant dense<0.000000e+00> : vector<8x8xf32>
    %32 = tpu.matmul %29, %21, %cst_16 {dimension_numbers = #tpu.dot_dimension_numbers<[1], [0], [0], [1], [0, 0, 1, 1], [], []>} : vector<8x8xf32>, vector<8x8xf32>, vector<8x8xf32> -> vector<8x8xf32>
    %33 = tpu.reciprocal %31 : vector<8x1xf32> -> vector<8x1xf32>
    %34 = vector.broadcast %33 : vector<8x1xf32> to vector<8x8xf32>
    %35 = arith.mulf %32, %34 : vector<8x8xf32>
    %c0_17 = arith.constant 0 : index
    %c0_18 = arith.constant 0 : index
    %36 = vector.load %arg10[%c0_17, %c0_18] : memref<32x32xf32, #tpu.memory_space<vmem>>, vector<8x32xf32>
    %cst_19 = arith.constant dense<0.000000e+00> : vector<8x32xf32>
    %37 = tpu.matmul %35, %36, %cst_19 {dimension_numbers = #tpu.dot_dimension_numbers<[1], [0], [0], [1], [0, 0, 1, 1], [], []>} : vector<8x8xf32>, vector<8x32xf32>, vector<8x32xf32> -> vector<8x32xf32>
    %38 = arith.addf %18, %37 : vector<8x32xf32>
    %39 = vector.extract_strided_slice %9 {offsets = [0, 8], sizes = [8, 8], strides = [1, 1]} : vector<8x32xf32> to vector<8x8xf32>
    %40 = vector.extract_strided_slice %10 {offsets = [0, 8], sizes = [8, 8], strides = [1, 1]} : vector<8x32xf32> to vector<8x8xf32>
    %41 = vector.extract_strided_slice %11 {offsets = [0, 8], sizes = [8, 8], strides = [1, 1]} : vector<8x32xf32> to vector<8x8xf32>
    %cst_20 = arith.constant dense<0.000000e+00> : vector<8x8xf32>
    %42 = tpu.matmul %39, %40, %cst_20 {dimension_numbers = #tpu.dot_dimension_numbers<[1], [1], [0], [0], [0, 0, 1, 0], [], []>} : vector<8x8xf32>, vector<8x8xf32>, vector<8x8xf32> -> vector<8x8xf32>
    %cst_21 = arith.constant -1.000000e+30 : f32
    %43 = vector.broadcast %cst_21 : f32 to vector<8x8xf32>
    %44 = arith.select %17, %42, %43 : vector<8x8xi1>, vector<8x8xf32>
    %cst_22 = arith.constant dense<0xFF800000> : vector<8xf32>
    %45 = vector.multi_reduction <maximumf>, %44, %cst_22 [1] : vector<8x8xf32> to vector<8xf32>
    %46 = vector.shape_cast %45 : vector<8xf32> to vector<8x1xf32>
    %47 = vector.broadcast %46 : vector<8x1xf32> to vector<8x8xf32>
    %48 = arith.subf %44, %47 : vector<8x8xf32>
    %49 = math.exp %48 : vector<8x8xf32>
    %cst_23 = arith.constant dense<0.000000e+00> : vector<8xf32>
    %50 = vector.multi_reduction <add>, %49, %cst_23 [1] : vector<8x8xf32> to vector<8xf32>
    %51 = vector.shape_cast %50 : vector<8xf32> to vector<8x1xf32>
    %cst_24 = arith.constant dense<0.000000e+00> : vector<8x8xf32>
    %52 = tpu.matmul %49, %41, %cst_24 {dimension_numbers = #tpu.dot_dimension_numbers<[1], [0], [0], [1], [0, 0, 1, 1], [], []>} : vector<8x8xf32>, vector<8x8xf32>, vector<8x8xf32> -> vector<8x8xf32>
    %53 = tpu.reciprocal %51 : vector<8x1xf32> -> vector<8x1xf32>
    %54 = vector.broadcast %53 : vector<8x1xf32> to vector<8x8xf32>
    %55 = arith.mulf %52, %54 : vector<8x8xf32>
    %c8 = arith.constant 8 : index
    %c0_25 = arith.constant 0 : index
    %56 = vector.load %arg10[%c8, %c0_25] : memref<32x32xf32, #tpu.memory_space<vmem>>, vector<8x32xf32>
    %cst_26 = arith.constant dense<0.000000e+00> : vector<8x32xf32>
    %57 = tpu.matmul %55, %56, %cst_26 {dimension_numbers = #tpu.dot_dimension_numbers<[1], [0], [0], [1], [0, 0, 1, 1], [], []>} : vector<8x8xf32>, vector<8x32xf32>, vector<8x32xf32> -> vector<8x32xf32>
    %58 = arith.addf %38, %57 : vector<8x32xf32>
    %59 = vector.extract_strided_slice %9 {offsets = [0, 16], sizes = [8, 8], strides = [1, 1]} : vector<8x32xf32> to vector<8x8xf32>
    %60 = vector.extract_strided_slice %10 {offsets = [0, 16], sizes = [8, 8], strides = [1, 1]} : vector<8x32xf32> to vector<8x8xf32>
    %61 = vector.extract_strided_slice %11 {offsets = [0, 16], sizes = [8, 8], strides = [1, 1]} : vector<8x32xf32> to vector<8x8xf32>
    %cst_27 = arith.constant dense<0.000000e+00> : vector<8x8xf32>
    %62 = tpu.matmul %59, %60, %cst_27 {dimension_numbers = #tpu.dot_dimension_numbers<[1], [1], [0], [0], [0, 0, 1, 0], [], []>} : vector<8x8xf32>, vector<8x8xf32>, vector<8x8xf32> -> vector<8x8xf32>
    %cst_28 = arith.constant -1.000000e+30 : f32
    %63 = vector.broadcast %cst_28 : f32 to vector<8x8xf32>
    %64 = arith.select %17, %62, %63 : vector<8x8xi1>, vector<8x8xf32>
    %cst_29 = arith.constant dense<0xFF800000> : vector<8xf32>
    %65 = vector.multi_reduction <maximumf>, %64, %cst_29 [1] : vector<8x8xf32> to vector<8xf32>
    %66 = vector.shape_cast %65 : vector<8xf32> to vector<8x1xf32>
    %67 = vector.broadcast %66 : vector<8x1xf32> to vector<8x8xf32>
    %68 = arith.subf %64, %67 : vector<8x8xf32>
    %69 = math.exp %68 : vector<8x8xf32>
    %cst_30 = arith.constant dense<0.000000e+00> : vector<8xf32>
    %70 = vector.multi_reduction <add>, %69, %cst_30 [1] : vector<8x8xf32> to vector<8xf32>
    %71 = vector.shape_cast %70 : vector<8xf32> to vector<8x1xf32>
    %cst_31 = arith.constant dense<0.000000e+00> : vector<8x8xf32>
    %72 = tpu.matmul %69, %61, %cst_31 {dimension_numbers = #tpu.dot_dimension_numbers<[1], [0], [0], [1], [0, 0, 1, 1], [], []>} : vector<8x8xf32>, vector<8x8xf32>, vector<8x8xf32> -> vector<8x8xf32>
    %73 = tpu.reciprocal %71 : vector<8x1xf32> -> vector<8x1xf32>
    %74 = vector.broadcast %73 : vector<8x1xf32> to vector<8x8xf32>
    %75 = arith.mulf %72, %74 : vector<8x8xf32>
    %c16 = arith.constant 16 : index
    %c0_32 = arith.constant 0 : index
    %76 = vector.load %arg10[%c16, %c0_32] : memref<32x32xf32, #tpu.memory_space<vmem>>, vector<8x32xf32>
    %cst_33 = arith.constant dense<0.000000e+00> : vector<8x32xf32>
    %77 = tpu.matmul %75, %76, %cst_33 {dimension_numbers = #tpu.dot_dimension_numbers<[1], [0], [0], [1], [0, 0, 1, 1], [], []>} : vector<8x8xf32>, vector<8x32xf32>, vector<8x32xf32> -> vector<8x32xf32>
    %78 = arith.addf %58, %77 : vector<8x32xf32>
    %79 = vector.extract_strided_slice %9 {offsets = [0, 24], sizes = [8, 8], strides = [1, 1]} : vector<8x32xf32> to vector<8x8xf32>
    %80 = vector.extract_strided_slice %10 {offsets = [0, 24], sizes = [8, 8], strides = [1, 1]} : vector<8x32xf32> to vector<8x8xf32>
    %81 = vector.extract_strided_slice %11 {offsets = [0, 24], sizes = [8, 8], strides = [1, 1]} : vector<8x32xf32> to vector<8x8xf32>
    %cst_34 = arith.constant dense<0.000000e+00> : vector<8x8xf32>
    %82 = tpu.matmul %79, %80, %cst_34 {dimension_numbers = #tpu.dot_dimension_numbers<[1], [1], [0], [0], [0, 0, 1, 0], [], []>} : vector<8x8xf32>, vector<8x8xf32>, vector<8x8xf32> -> vector<8x8xf32>
    %cst_35 = arith.constant -1.000000e+30 : f32
    %83 = vector.broadcast %cst_35 : f32 to vector<8x8xf32>
    %84 = arith.select %17, %82, %83 : vector<8x8xi1>, vector<8x8xf32>
    %cst_36 = arith.constant dense<0xFF800000> : vector<8xf32>
    %85 = vector.multi_reduction <maximumf>, %84, %cst_36 [1] : vector<8x8xf32> to vector<8xf32>
    %86 = vector.shape_cast %85 : vector<8xf32> to vector<8x1xf32>
    %87 = vector.broadcast %86 : vector<8x1xf32> to vector<8x8xf32>
    %88 = arith.subf %84, %87 : vector<8x8xf32>
    %89 = math.exp %88 : vector<8x8xf32>
    %cst_37 = arith.constant dense<0.000000e+00> : vector<8xf32>
    %90 = vector.multi_reduction <add>, %89, %cst_37 [1] : vector<8x8xf32> to vector<8xf32>
    %91 = vector.shape_cast %90 : vector<8xf32> to vector<8x1xf32>
    %cst_38 = arith.constant dense<0.000000e+00> : vector<8x8xf32>
    %92 = tpu.matmul %89, %81, %cst_38 {dimension_numbers = #tpu.dot_dimension_numbers<[1], [0], [0], [1], [0, 0, 1, 1], [], []>} : vector<8x8xf32>, vector<8x8xf32>, vector<8x8xf32> -> vector<8x8xf32>
    %93 = tpu.reciprocal %91 : vector<8x1xf32> -> vector<8x1xf32>
    %94 = vector.broadcast %93 : vector<8x1xf32> to vector<8x8xf32>
    %95 = arith.mulf %92, %94 : vector<8x8xf32>
    %c24 = arith.constant 24 : index
    %c0_39 = arith.constant 0 : index
    %96 = vector.load %arg10[%c24, %c0_39] : memref<32x32xf32, #tpu.memory_space<vmem>>, vector<8x32xf32>
    %cst_40 = arith.constant dense<0.000000e+00> : vector<8x32xf32>
    %97 = tpu.matmul %95, %96, %cst_40 {dimension_numbers = #tpu.dot_dimension_numbers<[1], [0], [0], [1], [0, 0, 1, 1], [], []>} : vector<8x8xf32>, vector<8x32xf32>, vector<8x32xf32> -> vector<8x32xf32>
    %98 = arith.addf %78, %97 : vector<8x32xf32>
    %c0_41 = arith.constant 0 : index
    %c0_42 = arith.constant 0 : index
    %99 = vector.load %arg11[%c0_41, %c0_42] : memref<1x32xf32, #tpu.memory_space<vmem>>, vector<1x32xf32>
    %100 = vector.broadcast %99 : vector<1x32xf32> to vector<8x32xf32>
    %101 = arith.addf %98, %100 : vector<8x32xf32>
    %c0_43 = arith.constant 0 : index
    %c0_44 = arith.constant 0 : index
    %c0_45 = arith.constant 0 : index
    %102 = vector.load %arg12[%c0_43, %c0_44, %c0_45] : memref<1x8x32xf32, #tpu.memory_space<vmem>>, vector<1x8x32xf32>
    %103 = vector.shape_cast %102 : vector<1x8x32xf32> to vector<8x32xf32>
    %104 = vector.shape_cast %101 : vector<8x32xf32> to vector<1x8x32xf32>
    tpu.vector_store %arg12[%c0_43, %c0_44, %c0_45], %104 {strides = array<i32>} : memref<1x8x32xf32, #tpu.memory_space<vmem>>, vector<1x8x32xf32>,
    return
  }
  func.func @transform_0(%arg0: i32, %arg1: i32) -> (i32, i32, i32) {
    %c0_i32 = arith.constant 0 : i32
    %c0_i32_0 = arith.constant 0 : i32
    return %arg0, %arg1, %c0_i32 : i32, i32, i32
  }
  func.func @transform_1(%arg0: i32, %arg1: i32) -> (i32, i32, i32) {
    %c0_i32 = arith.constant 0 : i32
    %c0_i32_0 = arith.constant 0 : i32
    %c0_i32_1 = arith.constant 0 : i32
    return %arg0, %c0_i32, %c0_i32_0 : i32, i32, i32
  }
  func.func @transform_2(%arg0: i32, %arg1: i32) -> (i32, i32) {
    %c0_i32 = arith.constant 0 : i32
    %c0_i32_0 = arith.constant 0 : i32
    %c0_i32_1 = arith.constant 0 : i32
    return %c0_i32, %c0_i32_0 : i32, i32
  }
  func.func @transform_3(%arg0: i32, %arg1: i32) -> (i32, i32) {
    %c0_i32 = arith.constant 0 : i32
    %c0_i32_0 = arith.constant 0 : i32
    %c0_i32_1 = arith.constant 0 : i32
    return %c0_i32, %c0_i32_0 : i32, i32
  }
  func.func @transform_4(%arg0: i32, %arg1: i32) -> (i32, i32) {
    %c0_i32 = arith.constant 0 : i32
    %c0_i32_0 = arith.constant 0 : i32
    %c0_i32_1 = arith.constant 0 : i32
    return %c0_i32, %c0_i32_0 : i32, i32
  }
  func.func @transform_5(%arg0: i32, %arg1: i32) -> (i32, i32) {
    %c0_i32 = arith.constant 0 : i32
    %c0_i32_0 = arith.constant 0 : i32
    %c0_i32_1 = arith.constant 0 : i32
    return %c0_i32, %c0_i32_0 : i32, i32
  }
  func.func @transform_6(%arg0: i32, %arg1: i32) -> (i32, i32) {
    %c0_i32 = arith.constant 0 : i32
    %c0_i32_0 = arith.constant 0 : i32
    %c0_i32_1 = arith.constant 0 : i32
    return %c0_i32, %c0_i32_0 : i32, i32
  }
  func.func @transform_7(%arg0: i32, %arg1: i32) -> (i32, i32) {
    %c0_i32 = arith.constant 0 : i32
    %c0_i32_0 = arith.constant 0 : i32
    %c0_i32_1 = arith.constant 0 : i32
    return %c0_i32, %c0_i32_0 : i32, i32
  }
  func.func @transform_8(%arg0: i32, %arg1: i32) -> (i32, i32) {
    %c0_i32 = arith.constant 0 : i32
    %c0_i32_0 = arith.constant 0 : i32
    %c0_i32_1 = arith.constant 0 : i32
    return %c0_i32, %c0_i32_0 : i32, i32
  }
  func.func @transform_9(%arg0: i32, %arg1: i32) -> (i32, i32) {
    %c0_i32 = arith.constant 0 : i32
    %c0_i32_0 = arith.constant 0 : i32
    %c0_i32_1 = arith.constant 0 : i32
    return %c0_i32, %c0_i32_0 : i32, i32
  }
  func.func @transform_10(%arg0: i32, %arg1: i32) -> (i32, i32, i32) {
    %c0_i32 = arith.constant 0 : i32
    %c0_i32_0 = arith.constant 0 : i32
    return %arg0, %arg1, %c0_i32 : i32, i32, i32
  }
}

</mosaic_0001>

<bundles_post_ra>
// kernel: tpu_custom_call.1
= control target key start
LH: loop header
LB: loop body
LE: loop exit
PB: predicated region body
PF: predicated region fallthrough
CT: control target
= control target key end

     0   :  { %s3021_s0 = inlined_call_operand.hbm [shape: f32[2,8,32], index: 0, kind: input, shape index: {}]   ;;  %s3022_s1 = inlined_call_operand.hbm [shape: f32[2,8,32], index: 1, kind: input, shape index: {}]   ;;  %s3023_s2 = inlined_call_operand.hbm [shape: f32[32,32], index: 2, kind: input, shape index: {}]   ;;  %s3024_s3 = inlined_call_operand.hbm [shape: f32[32,32], index: 3, kind: input, shape index: {}]   ;;  %s3025_s4 = inlined_call_operand.hbm [shape: f32[32,32], index: 4, kind: input, shape index: {}]   ;;  %s3026_s5 = inlined_call_operand.vmem [shape: f32[1,32], index: 5, kind: input, shape index: {}]   ;;  %s3027_s6 = inlined_call_operand.vmem [shape: f32[1,32], index: 6, kind: input, shape index: {}]   ;;  %s3028_s7 = inlined_call_operand.vmem [shape: f32[1,32], index: 7, kind: input, shape index: {}]   ;;  %s3029_s8 = inlined_call_operand.hbm [shape: f32[32,32], index: 8, kind: input, shape index: {}]   ;;  %s3030_s9 = inlined_call_operand.vmem [shape: f32[1,32], index: 9, kind: input, shape index: {}]   ;;  %s3031_s10 = inlined_call_operand.hbm [shape: f32[2,8,32], index: 10, kind: output, shape index: {}]  }
   0x1   :  { %3038 = sst [smem:[#allocation24_spill]] %s3023_s2 }
   0x2   :  { %3039 = sst [smem:[#allocation25_spill]] %s3024_s3 }
   0x3   :  { %3040 = sst [smem:[#allocation26_spill]] %s3025_s4 }
   0x4   :  { %3041 = sst [smem:[#allocation27_spill]] %s3026_s5 }
   0x5   :  { %3042 = sst [smem:[#allocation28_spill]] %s3029_s8 }
   0x6   :  { %3043 = sst [smem:[#allocation29_spill]] %s3030_s9 }
   0x7   :  { %3044 = sst [smem:[#allocation30_spill]] %s3031_s10 }
   0x8   :  { %15 = vsyncpa [#allocation5], 0 }
   0x9   :  { %17 = vsyncpa [#allocation5 + $0x1], 0 }
   0xa   :  { %18 = vsyncpa [#allocation8], 0 }
   0xb   :  { %20 = vsyncpa [#allocation8 + $0x1], 0 }
   0xc   :  { %21 = vsyncpa [#allocation11], 0 }
   0xd   :  { %22 = vsyncpa [#allocation14], 0 }
   0xe   :  { %23 = vsyncpa [#allocation6], 0 }
   0xf   :  { %25 = vsyncpa [#allocation6 + $0x1], 0  ;;  %s2551_s13 = smov 0   ;;  %s2553_s14 = smov 0  }
  0x10   :  { %s2555_s15 = smov 0   ;;  %s2557_s16 = smov 0  }
  0x11   :  { %s2559_s17 = smov 0   ;;  %s2561_s18 = smov 0  }
  0x12 LB: > { %3045 = sst [smem:[#allocation22_spill]] %s2471_s16  ;;  %s2582_s19 = sadd.s32 4294967295, %s2479_s18   ;;  %s2479_s18 = sphi %s2561_s18, %s31_s18   ;;  %s2475_s17 = sphi %s2559_s17, %s3080_s17   ;;  %s2471_s16 = sphi %s2557_s16, %s3079_s16   ;;  %s2467_s15 = sphi %s2555_s15, %s3078_s15   ;;  %s2463_s14 = sphi %s2553_s14, %s3077_s14   ;;  %s2459_s13 = sphi %s2551_s13, %s3076_s13  }
  0x13   : > { %p1882_p0 = scmp.ge.s32.totalorder %s2479_s18, 1  ;;  %p3033_p1 = scmp.eq.s32.totalorder %s2582_s19, 0 }
  0x14   : > { %p298_p2 = scmp.lt.s32.totalorder %s2479_s18, 3  ;;  %s2481_s21 = smov [#allocation9]  }
  0x15   : > { %s310_s22 = sshll.u32 %s2481_s21, 4  ;;  %s2482_s24 = smov [#allocation10]   ;;  %s2591_s22 = int_to_ptr.vmem [resolvable:$true] %s310_s22 }
  0x16   : > { %p2587_p3 = pnand %p1882_p0, %p298_p2  ;;  %s323_s25 = sshll.u32 %s2482_s24, 4  ;;  %s2602_s25 = int_to_ptr.vmem [resolvable:$true] %s323_s25 }
  0x17   : > { %s2483_s26 = smov [#allocation12]   ;;  %s3048_s2 = sld [smem:[#allocation24_spill]] }
  0x18   : > { %s3046_s20 = scalar_select %p2587_p3, 1, 0 }
  0x19   : > { %p2099_p4 = pneg %p2587_p3  ;;  %s2604_s27 = sshll.u32 %s2483_s26, 4  ;;  %s337_s27 = int_to_ptr.vmem [resolvable:$true] %s2604_s27 }
  0x1b   : > { %p2598_p6 = pnand %p2099_p4, %p3033_p1 }
  0x1d   : > { %s2209_s30 = scalar_lea.hbm %s3048_s2, 512  ;;  %p2614_p8 = pneg %p2598_p6 }
  0x1e   : > { %p2210_p7 = scmp.ne.s32.totalorder %s3048_s2, %s2209_s30  ;;  %p2216_p11 = scmp.lt.u32.totalorder %s2209_s30, %s3048_s2 }
  0x20   : > { %p2212_p9 = pnand %p2614_p8, %p2210_p7 }
  0x22   : > { %p2213_p10 = pneg %p2212_p9 }
  0x24   : > { %p2218_p12 = pnand %p2216_p11, %p2213_p10 }
  0x26   : > { %2221 = shalt.err (!%p2218_p12)
}
  0x27   : > { %s2222_s28 = scalar_lea.vmem %s2591_s22, 512  ;;  %p2230_p4 = scmp.lt.s32.totalorder %s2591_s22, %s2591_s22 }
  0x28   : > { %p2223_p13 = scmp.ne.s32.totalorder %s2591_s22, %s2222_s28  ;;  %p2231_p5 = scmp.lt.s32.totalorder %s2222_s28, %s2222_s28 }
  0x2a   : > { %p2225_p0 = pnand %p2223_p13, %p2614_p8  ;;  %p2232_p7 = por %p2231_p5, %p2230_p4 }
  0x2c   : > { %p2226_p2 = pneg %p2225_p0 }
  0x2e   : > { %p2233_p9 = pnand %p2232_p7, %p2226_p2 }
  0x30   : > { %2236 = shalt.err (!%p2233_p9)
}
  0x31   : > { %s2484_s29 = smov 128   ;;  %s2485_s30 = smov 8  }
  0x32   : > { %2102 = dma.hbm_to_vmem [thread:$0]  (!%p2598_p6), %s3048_s2, 512, %s2591_s22, [#allocation8], %s2484_s29, %s2484_s29, %s2485_s30  }
  0x33   : > { %s3050_s3 = sld [smem:[#allocation25_spill]] }
  0x39   : > { %s2237_s28 = scalar_lea.hbm %s3050_s3, 512 }
  0x3a   : > { %p2238_p5 = scmp.ne.s32.totalorder %s3050_s3, %s2237_s28  ;;  %p2244_p12 = scmp.lt.u32.totalorder %s2237_s28, %s3050_s3 }
  0x3c   : > { %p2240_p10 = pnand %p2238_p5, %p2614_p8 }
  0x3e   : > { %p2241_p11 = pneg %p2240_p10 }
  0x40   : > { %p2246_p13 = pnand %p2244_p12, %p2241_p11 }
  0x42   : > { %2249 = shalt.err (!%p2246_p13)
}
  0x43   : > { %s2250_s22 = scalar_lea.vmem %s2602_s25, 512  ;;  %p2258_p7 = scmp.lt.s32.totalorder %s2602_s25, %s2602_s25 }
  0x44   : > { %p2251_p0 = scmp.ne.s32.totalorder %s2602_s25, %s2250_s22  ;;  %p2259_p9 = scmp.lt.s32.totalorder %s2250_s22, %s2250_s22 }
  0x46   : > { %p2253_p2 = pnand %p2251_p0, %p2614_p8  ;;  %p2260_p5 = por %p2259_p9, %p2258_p7 }
  0x48   : > { %p2254_p4 = pneg %p2253_p2 }
  0x4a   : > { %p2261_p10 = pnand %p2260_p5, %p2254_p4 }
  0x4c   : > { %2264 = shalt.err (!%p2261_p10)
}
  0x4d   : > { %2105 = dma.hbm_to_vmem [thread:$0]  (!%p2598_p6), %s3050_s3, 512, %s2602_s25, [#allocation11], %s2484_s29, %s2484_s29, %s2485_s30  }
  0x4e   : > { %s3051_s4 = sld [smem:[#allocation26_spill]] }
  0x54   : > { %s2265_s11 = scalar_lea.hbm %s3051_s4, 512 }
  0x55   : > { %p2266_p11 = scmp.ne.s32.totalorder %s3051_s4, %s2265_s11  ;;  %p2272_p0 = scmp.lt.u32.totalorder %s2265_s11, %s3051_s4 }
  0x57   : > { %p2268_p12 = pnand %p2266_p11, %p2614_p8 }
  0x59   : > { %p2269_p13 = pneg %p2268_p12 }
  0x5b   : > { %p2274_p2 = pnand %p2272_p0, %p2269_p13 }
  0x5d   : > { %2277 = shalt.err (!%p2274_p2)
}
  0x5e   : > { %s2278_s22 = scalar_lea.vmem %s337_s27, 512  ;;  %p2286_p5 = scmp.lt.s32.totalorder %s337_s27, %s337_s27 }
  0x5f   : > { %p2279_p4 = scmp.ne.s32.totalorder %s337_s27, %s2278_s22  ;;  %p2287_p10 = scmp.lt.s32.totalorder %s2278_s22, %s2278_s22 }
  0x61   : > { %p2281_p7 = pnand %p2279_p4, %p2614_p8  ;;  %p2288_p1 = por %p2287_p10, %p2286_p5 }
  0x63   : > { %p2282_p9 = pneg %p2281_p7 }
  0x65   : > { %p2289_p3 = pnand %p2288_p1, %p2282_p9 }
  0x67   : > { %2292 = shalt.err (!%p2289_p3)
}
  0x68   : > { %2108 = dma.hbm_to_vmem [thread:$0]  (!%p2598_p6), %s3051_s4, 512, %s337_s27, [#allocation11], %s2484_s29, %s2484_s29, %s2485_s30  }
  0x69   : > { %s2486_s9 = smov [#allocation13]   ;;  %s3052_s8 = sld [smem:[#allocation28_spill]] }
  0x6a   : > { %s358_s10 = sshll.u32 %s2486_s9, 4  ;;  %s359_s10 = int_to_ptr.vmem [resolvable:$true] %s358_s10 }
  0x6f   : > { %s2293_s12 = scalar_lea.hbm %s3052_s8, 512 }
  0x70   : > { %p2294_p1 = scmp.ne.s32.totalorder %s3052_s8, %s2293_s12  ;;  %p2300_p12 = scmp.lt.u32.totalorder %s2293_s12, %s3052_s8 }
  0x72   : > { %p2296_p3 = pnand %p2294_p1, %p2614_p8 }
  0x74   : > { %p2297_p11 = pneg %p2296_p3 }
  0x76   : > { %p2302_p13 = pnand %p2300_p12, %p2297_p11 }
  0x78   : > { %2305 = shalt.err (!%p2302_p13)
}
  0x79   : > { %s2306_s27 = scalar_lea.vmem %s359_s10, 512  ;;  %p2314_p7 = scmp.lt.s32.totalorder %s359_s10, %s359_s10 }
  0x7a   : > { %p2307_p0 = scmp.ne.s32.totalorder %s359_s10, %s2306_s27  ;;  %p2315_p9 = scmp.lt.s32.totalorder %s2306_s27, %s2306_s27 }
  0x7c   : > { %p2309_p2 = pnand %p2307_p0, %p2614_p8  ;;  %p2316_p5 = por %p2315_p9, %p2314_p7 }
  0x7e   : > { %p2310_p4 = pneg %p2309_p2 }
  0x80   : > { %p2317_p10 = pnand %p2316_p5, %p2310_p4 }
  0x82   : > { %2320 = shalt.err (!%p2317_p10)
}
  0x83   : > { %2111 = dma.hbm_to_vmem [thread:$0]  (!%p2598_p6), %s3052_s8, 512, %s359_s10, [#allocation14], %s2484_s29, %s2484_s29, %s2485_s30  }
  0x84   : > { %s1881_s23 = sadd.s32 4294967294, %s2479_s18   ;;  %s43_s21 = sadd.s32 1, %s2475_s17 }
  0x85   : > { %p45_p8 = scmp.ge.s32.totalorder %s43_s21, 2  ;;  %s52_s9 = sadd.s32 1, %s2467_s15 }
  0x86   : > { %p59_p1 = scmp.ne.s32.totalorder %s2467_s15, %s2463_s14  ;;  %p60_p3 = scmp.eq.s32.totalorder %s2479_s18, 0 }
  0x87   : > { %s3082_s21 = smov (%p45_p8, %s43_s21), 0  ;;  %p65_p12 = scmp.ne.s32.totalorder %s2463_s14, %s2459_s13 }
  0x88   : > { %3053 = sst [smem:[#allocation23_spill]] %s3082_s21  ;;  %p2715_p11 = por %p60_p3, %p59_p1 }
  0x89   : > { %s47_s29 = ssub.s32 %s2475_s17, %s3082_s21  ;;  %p285_p6 = scmp.eq.s32.totalorder %s2582_s19, 1 }
  0x8a   : > { %p50_p13 = scmp.eq.s32.totalorder %s47_s29, 0  ;;  %p3055_p0 = scmp.eq.s32.totalorder %s2582_s19, 0 }
  0x8b   : > { %p2730_p4 = por %p285_p6, %p59_p1  ;;  %p291_p7 = scmp.eq.s32.totalorder %s1881_s23, 1 }
  0x8c   : > { %p2726_p2 = por %p3055_p0, %p65_p12  ;;  %p2127_p5 = scmp.lt.s32.totalorder %s2479_s18, 2 }
  0x8d   : > { %s3057_s10 = scalar_select %p2730_p4, 1, 0 }
  0x8e   : > { %s3056_s30 = scalar_select %p2726_p2, 1, 0 }
  0x8f   : > { %s2735_s11 = scalar_select %p50_p13, %s2467_s15, %s52_s9  }
  0x90   : > { %p2737_p9 = por %p291_p7, %p65_p12  ;;  %s375_s24 = sand.u32 1, %s2467_s15  }
  0x91   : > { %s1889_s26 = sshll.u32 %s2475_s17, 7  ;;  %s2744_s28 = sshll.u32 %s375_s24, 3 }
  0x92   : > { %s3058_s12 = scalar_select %p2737_p9, 1, 0 }
  0x93   : > { %s2749_s25 = scalar_lea.hbm %s3021_s0, %s1889_s26  ;;  %s379_s5 = scalar_lea.vmem [#allocation4], %s2744_s28 }
  0x94   : > { %s387_s23 = sshll.u32 %s379_s5, 4  ;;  %p2754_p10 = pnand %p2127_p5, %p2715_p11  ;;  %s2758_s23 = int_to_ptr.vmem [resolvable:$true] %s387_s23 }
  0x95   : > { %s2763_s27 = scalar_lea.hbm %s3022_s1, %s1889_s26  ;;  %s376_s2 = scalar_lea.sflag [#allocation5], %s375_s24 }
  0x96   : > { %s2321_s3 = scalar_lea.hbm %s2749_s25, 128  ;;  %p2323_p1 = pneg %p2754_p10 }
  0x97   : > { %p2322_p8 = scmp.ne.s32.totalorder %s2749_s25, %s2321_s3  ;;  %s2326_s4 = scalar_lea.hbm %s3021_s0, 256 }
  0x98   : > { %p2327_p12 = scmp.lt.u32.totalorder %s2749_s25, %s3021_s0  ;;  %p2328_p6 = scmp.lt.u32.totalorder %s2326_s4, %s2321_s3 }
  0x99   : > { %p2324_p3 = pnand %p2323_p1, %p2322_p8  ;;  %p2330_p0 = scmp.lt.u32.totalorder %s2321_s3, %s2749_s25 }
  0x9a   : > { %p2329_p13 = por %p2328_p6, %p2327_p12 }
  0x9b   : > { %p2325_p11 = pneg %p2324_p3 }
  0x9c   : > { %p2331_p7 = por %p2330_p0, %p2329_p13 }
  0x9e   : > { %p2332_p5 = pnand %p2331_p7, %p2325_p11 }
  0xa0   : > { %2335 = shalt.err (!%p2332_p5)
}
  0xa1   : > { %s2336_s24 = scalar_lea.vmem %s2758_s23, 128  ;;  %s2487_s26 = smov [#allocation4]  }
  0xa2   : > { %p2337_p8 = scmp.ne.s32.totalorder %s2758_s23, %s2336_s24  ;;  %s2341_s29 = sshll.u32 %s2487_s26, 4  ;;  %s2342_s29 = int_to_ptr.vmem [resolvable:$false] %s2341_s29 }
  0xa3   : > { %s2343_s8 = scalar_lea.vmem %s2342_s29, 256  ;;  %p2344_p4 = scmp.lt.s32.totalorder %s2758_s23, %s2342_s29 }
  0xa4   : > { %p2339_p3 = pnand %p2337_p8, %p2323_p1  ;;  %p2345_p12 = scmp.lt.s32.totalorder %s2343_s8, %s2336_s24 }
  0xa6   : > { %p2340_p9 = pneg %p2339_p3  ;;  %p2346_p6 = por %p2345_p12, %p2344_p4 }
  0xa8   : > { %p2347_p13 = pnand %p2346_p6, %p2340_p9 }
  0xaa   : > { %2350 = shalt.err (!%p2347_p13)
}
  0xab   : > { %2115 = dma.hbm_to_vmem [thread:$0]  (!%p2754_p10), %s2749_s25, 128, %s2758_s23, %s376_s2  }
  0xac   : > { %s394_s3 = sand.u32 1, %s2479_s18   ;;  %s398_s4 = scalar_lea.vmem [#allocation7], %s2744_s28 }
  0xad   : > { %s405_s21 = sshll.u32 %s398_s4, 4  ;;  %s395_s22 = scalar_lea.sflag [#allocation8], %s394_s3  ;;  %s406_s21 = int_to_ptr.vmem [resolvable:$true] %s405_s21 }
  0xae   : > { %s2351_s16 = scalar_lea.hbm %s2763_s27, 128  ;;  %s2356_s26 = scalar_lea.hbm %s3022_s1, 256 }
  0xaf   : > { %p2352_p4 = scmp.ne.s32.totalorder %s2763_s27, %s2351_s16  ;;  %p2357_p0 = scmp.lt.u32.totalorder %s2763_s27, %s3022_s1 }
  0xb0   : > { %p2358_p7 = scmp.lt.u32.totalorder %s2356_s26, %s2351_s16  ;;  %p2360_p8 = scmp.lt.u32.totalorder %s2351_s16, %s2763_s27 }
  0xb1   : > { %p2354_p9 = pnand %p2352_p4, %p2323_p1 }
  0xb2   : > { %p2359_p5 = por %p2358_p7, %p2357_p0 }
  0xb3   : > { %p2355_p11 = pneg %p2354_p9 }
  0xb4   : > { %p2361_p3 = por %p2360_p8, %p2359_p5 }
  0xb6   : > { %p2362_p12 = pnand %p2361_p3, %p2355_p11 }
  0xb8   : > { %2365 = shalt.err (!%p2362_p12)
}
  0xb9   : > { %s2366_s2 = scalar_lea.vmem %s406_s21, 128  ;;  %s2488_s28 = smov [#allocation7]  }
  0xba   : > { %p2367_p6 = scmp.ne.s32.totalorder %s406_s21, %s2366_s2  ;;  %s2371_s25 = sshll.u32 %s2488_s28, 4  ;;  %s2372_s25 = int_to_ptr.vmem [resolvable:$false] %s2371_s25 }
  0xbb   : > { %s2373_s23 = scalar_lea.vmem %s2372_s25, 256  ;;  %p2374_p9 = scmp.lt.s32.totalorder %s406_s21, %s2372_s25 }
  0xbc   : > { %p2369_p13 = pnand %p2367_p6, %p2323_p1  ;;  %p2375_p2 = scmp.lt.s32.totalorder %s2373_s23, %s2366_s2 }
  0xbe   : > { %p2370_p4 = pneg %p2369_p13  ;;  %p2376_p0 = por %p2375_p2, %p2374_p9 }
  0xc0   : > { %p2377_p7 = pnand %p2376_p0, %p2370_p4 }
  0xc2   : > { %2380 = shalt.err (!%p2377_p7)
}
  0xc3   : > { %2118 = dma.hbm_to_vmem [thread:$0]  (!%p2754_p10), %s2763_s27, 128, %s406_s21, %s395_s22  }
  0xc4   : > { %p3060_p11 = scmp.ne.s32.totalorder %s3046_s20, 0 }
  0xc5   : > { %s2814_s3 = sand.u32 (!%p3060_p11), 1, %s2463_s14   ;;  %p3061_p2 = scmp.ne.s32.totalorder (!%p3060_p11), %s3056_s30, 0 }
  0xc6   : > { %414 = sbr.rel (%p3060_p11) target bundleno = 2350 (0x92e), region = 60  ;;  %s2817_s4 = sshll.u32 (!%p3060_p11), %s2814_s3, 3 }
  0xc7   : > { %s417_s16 = scalar_lea.sflag (!%p3060_p11), [#allocation5], %s2814_s3  ;;  %s420_s5 = scalar_lea.vmem (!%p3060_p11), [#allocation4], %s2817_s4 }
  0xcd   : > { %2434 = dma.done.wait (%p3061_p2), %s417_s16, 128  }
  0xce   : > { %2436 = vsyncadd (%p3061_p2), %s417_s16, 4294967168  ;;  %s425_s20 = sand.u32 1, %s2582_s19   ;;  %s429_s27 = scalar_lea.vmem [#allocation7], %s2817_s4 }
  0xcf   : > { %s426_s9 = scalar_lea.sflag [#allocation8], %s425_s20 }
  0xd0   : > { %2438 = dma.done.wait (%p3061_p2), %s426_s9, 128  }
  0xd1   : > { %2440 = vsyncadd (%p3061_p2), %s426_s9, 4294967168  ;;  %p3062_p10 = scmp.eq.s32.totalorder %s2582_s19, 0 }
  0xd3   : > { %2442 = dma.done.wait (%p3062_p10), [#allocation8], 512   ;;  %p3063_p1 = pmov %p3062_p10 }
  0xd5   : > { %2444 = vsyncadd (%p3063_p1), [#allocation8], 4294966784  ;;  %p3064_p5 = pmov %p3063_p1 }
  0xd6   : > { %p3065_p8 = pmov %p3063_p1 }
  0xd7   : > { %2446 = dma.done.wait (%p3064_p5), [#allocation11], 1024  }
  0xd8   : > { %2448 = vsyncadd (%p3065_p8), [#allocation11], 4294966272  ;;  %p3066_p3 = pmov %p3063_p1 }
  0xd9   : > { %p3067_p12 = pmov %p3063_p1 }
  0xda   : > { %2450 = dma.done.wait (%p3066_p3), [#allocation14], 512  }
  0xdb   : > { %2452 = vsyncadd (%p3067_p12), [#allocation14], 4294966784  ;;  %v2489_v0 = vmov 0.0|0.0   ;;  %vm2490_vm0 = vmmov 0   ;;  %v2491_v1 = vmov 0.0   ;;  %v492_v2 = vld [vmem:[#allocation10] sm:$0xff]  ;;  %v749_v38 = vlaneseq }
  0xdc   : > { %2059 = vmatprep.subr.bf16.mxu0 %v2489_v0  ;;  %1974 = vmatprep.mubr.msk.f32.mxu0 %vm2490_vm0, %v2491_v1  ;;  %v493_v3 = vld [vmem:[#allocation10 + $0x8] sm:$0xff]  ;;  %v494_v4 = vld [vmem:[#allocation10 + $0x10] sm:$0xff]  ;;  %v495_v6 = vld [vmem:[#allocation10 + $0x18] sm:$0xff]  ;;  %vm503_vm1 = vcmask 261120   ;;  %s3068_s29 = sld [smem:[#allocation27_spill]]  ;;  %vm756_vm2 = vcmask 64512  }
  0xdd   : > { %2065 = vmatprep.subr.bf16.mxu1 %v2489_v0  ;;  %1985 = vmatprep.mubr.msk.f32.mxu1 %vm2490_vm0, %v2491_v1  ;;  %v2060_v5 = vpack.c.bf16 %v493_v3, %v492_v2  ;;  %v578_v7 = vld [vmem:[#allocation12] sm:$0xff]  ;;  %v579_v8 = vld [vmem:[#allocation12 + $0x8] sm:$0xff]  ;;  %v2063_v9 = vpack.c.bf16 %v495_v6, %v494_v4  ;;  %v580_v11 = vld [vmem:[#allocation12 + $0x10] sm:$0xff]  ;;  %s2492_s8 = smov 120   ;;  %s2493_s2 = smov 112   ;;  %v2894_v39 = vshrl.u32 %v749_v38, 7 }
  0xde   : > { %v2066_v10 = vpack.c.bf16 %v579_v8, %v578_v7  ;;  %v581_v12 = vld [vmem:[#allocation12 + $0x18] sm:$0xff]  ;;  %v661_v13 = vld [vmem:[#allocation9] sm:$0xff]  ;;  %v662_v14 = vld [vmem:[#allocation9 + $0x8] sm:$0xff]  ;;  %v2896_v40 = vand.u32 127, %v749_v38  ;;  %s2494_s28 = smov 104   ;;  %s3069_s25 = sld [smem:[#allocation22_spill]] }
  0xdf   : > { %2061 = vmatpush3.bf16.msra.mxu0 %v2060_v5  ;;  %v2069_v15 = vpack.c.bf16 %v581_v12, %v580_v11  ;;  %v491_v16 = vld [vmem:[%s429_s27] sm:$0xff]  ;;  %v2072_v17 = vpack.c.bf16 %v662_v14, %v661_v13  ;;  %v660_v21 = vld [vmem:[%s420_s5] sm:$0xff]  ;;  %s3070_s5 = sld [smem:[#allocation29_spill]]  ;;  %s486_s9 = scalar_lea.vmem [#allocation15], %s2817_s4 }
  0xe0   : > { %2062 = vmatprep.subr.bf16.mxu0 %v2489_v0  ;;  %2067 = vmatpush3.bf16.msra.mxu1 %v2066_v10  ;;  %v663_v18 = vld [vmem:[#allocation9 + $0x10] sm:$0xff]  ;;  %v664_v19 = vld [vmem:[#allocation9 + $0x18] sm:$0xff]  ;;  %vm755_vm3 = vcmp.le.s32.totalorder %v2896_v40, %v2894_v39  ;;  %v918_v58 = vld [vmem:[#allocation13] sm:$0xff]  ;;  %s1739_s27 = sshll.u32 %s486_s9, 4  ;;  %s3071_s21 = sld [smem:[#allocation30_spill]]  ;;  %s2973_s27 = int_to_ptr.vmem [resolvable:$true] %s1739_s27 }
  0xe1   : > { %2068 = vmatprep.subr.bf16.mxu1 %v2489_v0  ;;  %v2075_v20 = vpack.c.bf16 %v664_v19, %v663_v18  ;;  %v1900_v22 = vld [vmem:[%s3027_s6] ss:$0 sm:$0xff]  ;;  %v1086_v61 = vld [vmem:[#allocation13 + $0x8] sm:$0xff]  ;;  %s1725_s24 = scalar_lea.sflag [#allocation6], %s2814_s3  ;;  %s2381_s26 = scalar_lea.vmem %s2973_s27, 128 }
  0xe2   : > { %v1902_v24 = vld [vmem:[%s3028_s7] ss:$0 sm:$0xff]  ;;  %p2382_p6 = scmp.ne.s32.totalorder %s2973_s27, %s2381_s26  ;;  %p3072_p13 = scmp.ne.s32.totalorder %s3057_s10, 0 }
  0xe3   : > { %2064 = vmatpush3.bf16.msra.mxu0 %v2063_v9  ;;  %v1904_v30 = vld [vmem:[%s3068_s29] ss:$0 sm:$0xff]  ;;  %s2495_s4 = smov [#allocation15]  }
  0xe4   : > { %2071 = vmatprep.subr.bf16.mxu0 %v2489_v0  ;;  %2070 = vmatpush3.bf16.msra.mxu1 %v2069_v15  ;;  %s1924_s20 = sshll.u32 %s3069_s25, 7  ;;  %p2383_p4 = pnand %p2382_p6, %p3072_p13 }
  0xe5   : > { %1999 = vmatprep.subr.mxu1 %v2491_v1  ;;  %s2385_s29 = sshll.u32 %s2495_s4, 4  ;;  %s2386_s29 = int_to_ptr.vmem [resolvable:$false] %s2385_s29 }
  0xe6   : > { %1975 = vmatmul.mubr.msk.f32.vlgmr.msra.gmra.mrb[0].mxu0 %vm503_vm1, %v491_v16  ;;  %s2971_s22 = scalar_lea.hbm %s3071_s21, %s1924_s20  ;;  %p2384_p9 = pneg %p2383_p4 }
  0xe7   : > { %2073 = vmatpush3.bf16.msra.mxu0 %v2072_v17  ;;  %1996 = vmatprep.mubr.msk.f32.mxu0 %vm2490_vm0, %v2491_v1  ;;  %p2388_p0 = scmp.lt.s32.totalorder %s2973_s27, %s2386_s29 }
  0xe8   : > { %2074 = vmatprep.subr.bf16.mxu0 %v2489_v0  ;;  %1986 = vmatmul.mubr.msk.f32.vlgmr.msra.gmra.mrb[0].mxu1 %vm503_vm1, %v491_v16 }
  0xe9   : > { %2001 = vmatprep.mubr.msk.f32.mxu1 %vm2490_vm0, %v2491_v1 }
  0xeb   : > { %2076 = vmatpush3.bf16.msra.mxu0 %v2075_v20 }
  0xec   : > { %2009 = vmatprep.subr.mxu0 %v2491_v1 }
  0xee   : > { %1997 = vmatmul.mubr.msk.f32.vlgmr.msra.gmra.mrb[2].mxu0 %vm503_vm1, %v660_v21 }
  0xef   : > { %2011 = vmatprep.mubr.msk.f32.mxu0 %vm2490_vm0, %v2491_v1 }
 0x1b9   : > { %v573_v23 = vpop.f32.mrb[0].mxu0 }
 0x1ba   : > { %v574_v25 = vadd.f32 %v1900_v22, %v573_v23  ;;  %v1976_v26 = vpop.f32.mrb[1].mxu0 }
 0x1bb   : > { %v655_v27 = vpop.f32.mrb[0].mxu1 }
 0x1bc   : > { %577 = vst.msk [vmem:[#allocation2] sm:$0xff] %vm503_vm1, %v574_v25  ;;  %v656_v28 = vadd.f32 %v1902_v24, %v655_v27  ;;  %v1987_v29 = vpop.f32.mrb[1].mxu1 }
 0x1be   : > { %659 = vst.msk [vmem:[#allocation3] sm:$0xff] %vm503_vm1, %v656_v28  ;;  %v1399_v28 = vld [vmem:[#allocation13 + $0x10] sm:$0xff] }
 0x1c1   : > { %v742_v31 = vpop.f32.mrb[2].mxu0 }
 0x1c2   : > { %v1998_v32 = vpop.f32.mrb[3].mxu0  ;;  %v743_v34 = vadd.f32 %v1904_v30, %v742_v31 }
 0x1c3   : > { %v2873_v33 = vld [vmem:[#allocation2] sm:$0xff] }
 0x1c4   : > { %921 = vrot.lane.b32.xlu0 %v2873_v33, %s2492_s8  ;;  %2000 = vmatpush3.xpose.msk.msra.mxu1 %vm756_vm2, %v2873_v33 }
 0x1c5   : > { %2004 = vmatprep.subr.mxu1 %v2491_v1  ;;  %v2880_v35 = vld [vmem:[#allocation3] sm:$0xff] }
 0x1c7   : > { %2002 = vmatmul.mubr.msk.f32.vlgmr.msra.gmra.mrb[2].mxu1 %vm756_vm2, %v743_v34 }
 0x1c8   : > { %919 = vrot.lane.b32.xlu0 %v743_v34, %s2492_s8  ;;  %2005 = vmatpush3.msra.mxu1 %v2880_v35 }
 0x1c9   : > { %2006 = vmatprep.mubr.msk.f32.mxu1 %vm2490_vm0, %v2491_v1  ;;  %2014 = vmatprep.subr.mxu1 %v2491_v1 }
 0x1cc   : > { %1008 = vrot.lane.b32.xlu0 %v2880_v35, %s2492_s8  ;;  %s2387_s8 = scalar_lea.vmem %s2386_s29, 256 }
 0x1cd   : > { %p2389_p7 = scmp.lt.s32.totalorder %s2387_s8, %s2381_s26 }
 0x1cf   : > { %p2390_p11 = por %p2389_p7, %p2388_p0 }
 0x1d0   : > { %1235 = vrot.lane.b32.xlu0 %v2873_v33, %s2493_s2 }
 0x1d1   : > { %p2391_p2 = pnand %p2390_p11, %p2384_p9 }
 0x236   : > { %v922_v36 = vpop.permute.xlu0 %921 }
 0x237   : > { %2010 = vmatpush3.xpose.msk.msra.mxu0 %vm756_vm2, %v922_v36 }
 0x238   : > { %2019 = vmatprep.subr.mxu0 %v2491_v1 }
 0x23a   : > { %v920_v37 = vpop.permute.xlu0 %919 }
 0x23b   : > { %2012 = vmatmul.mubr.msk.f32.vlgmr.msra.gmra.mrb[4].mxu0 %vm756_vm2, %v920_v37 }
 0x23c   : > { %2021 = vmatprep.mubr.msk.f32.mxu0 %vm2490_vm0, %v2491_v1  ;;  %2020 = vmatpush3.msra.mxu0 %v1086_v61 }
 0x23d   : > { %2029 = vmatprep.subr.mxu0 %v2491_v1 }
 0x23e   : > { %v1009_v53 = vpop.permute.xlu0 %1008 }
 0x242   : > { %v1236_v62 = vpop.permute.xlu0 %1235 }
 0x29a   : > { %v829_v41 = vpop.f32.mrb[2].mxu1 }
 0x29b   : > { %v833_v42 = vsel %vm755_vm3, %v829_v41, -1e+30  ;;  %v2003_v43 = vpop.f32.mrb[3].mxu1 }
 0x29c   : > { %v834_v44 = vsel %vm756_vm2, %v833_v42, -inf }
 0x29d   : > { %835 = vmax.xlane.f32.xlu1 %v834_v44 }
 0x30e   : > { %v993_v45 = vpop.f32.mrb[4].mxu0 }
 0x30f   : > { %v997_v46 = vsel %vm755_vm3, %v993_v45, -1e+30  ;;  %v2013_v47 = vpop.f32.mrb[5].mxu0 }
 0x310   : > { %v998_v48 = vsel %vm756_vm2, %v997_v46, -inf }
 0x311   : > { %999 = vmax.xlane.f32.xlu1 %v998_v48 }
 0x32a   : > { %v836_v49 = vpop.xlane.xlu1 %835 }
 0x32b   : > { %v837_v50 = vsub.f32 %v833_v42, %v836_v49 }
 0x32d   : > { %v838_v51 = vmul.f32 1.442695, %v837_v50 }
 0x32f   : > { %2193 = vpow2.f32 %v838_v51 }
 0x339   : > { %v2194_v52 = vpop.eup %2193 }
 0x33a   : > { %2007 = vmatmul.mubr.msk.f32.vlgmr.msra.gmra.mrb[4].mxu1 %vm756_vm2, %v2194_v52  ;;  %v840_v54 = vsel %vm756_vm2, %v2194_v52, 0.0 }
 0x33b   : > { %841 = vadd.xlane.f32.xlu0 %v840_v54  ;;  %2015 = vmatpush3.msra.mxu1 %v1009_v53  ;;  %v1922_v53 = vld [vmem:[%s3070_s5] ss:$0 sm:$0xff] }
 0x33c   : > { %2016 = vmatprep.mubr.msk.f32.mxu1 %vm2490_vm0, %v2491_v1  ;;  %2024 = vmatprep.subr.mxu1 %v2491_v1 }
 0x351   : > { %1321 = vrot.lane.b32.xlu0 %v2880_v35, %s2493_s2 }
 0x355   : > { %1474 = vrot.lane.b32.xlu0 %v743_v34, %s2494_s28 }
 0x39e   : > { %v1000_v55 = vpop.xlane.xlu1 %999 }
 0x39f   : > { %v1001_v56 = vsub.f32 %v997_v46, %v1000_v55 }
 0x3a1   : > { %v1002_v57 = vmul.f32 1.442695, %v1001_v56 }
 0x3a3   : > { %2195 = vpow2.f32 %v1002_v57 }
 0x3ad   : > { %v2196_v59 = vpop.eup %2195 }
 0x3ae   : > { %2017 = vmatmul.mubr.msk.f32.vlgmr.msra.gmra.mrb[6].mxu1 %vm756_vm2, %v2196_v59  ;;  %v1004_v60 = vsel %vm756_vm2, %v2196_v59, 0.0 }
 0x3af   : > { %1005 = vadd.xlane.f32.xlu1 %v1004_v60  ;;  %2025 = vmatpush3.msra.mxu1 %v918_v58 }
 0x3b0   : > { %2026 = vmatprep.mubr.msk.f32.mxu1 %vm2490_vm0, %v2491_v1  ;;  %2034 = vmatprep.subr.mxu1 %v2491_v1 }
 0x3c0   : > { %1233 = vrot.lane.b32.xlu1 %v743_v34, %s2493_s2 }
 0x3c8   : > { %v842_v63 = vpop.xlane.xlu0 %841 }
 0x3c9   : > { %2197 = vrcp.f32 %v842_v63 }
 0x3cc   : > { %v1322_v5 = vpop.permute.xlu0 %1321 }
 0x3d0   : > { %v1475_v27 = vpop.permute.xlu0 %1474 }
 0x3d3   : > { %v2198_v0 = vpop.eup %2197 }
 0x40d   : > { %v912_v2 = vpop.f32.mrb[4].mxu1 }
 0x40e   : > { %v917_v3 = vmul.f32 %v2198_v0, %v912_v2  ;;  %v2008_v4 = vpop.f32.mrb[5].mxu1 }
 0x410   : > { %2027 = vmatmul.mubr.msk.f32.vlgmr.msra.gmra.mrb[8].mxu1 %vm756_vm2, %v917_v3 }
 0x411   : > { %2035 = vmatpush3.msra.mxu1 %v1322_v5  ;;  %2036 = vmatprep.mubr.msk.f32.mxu1 %vm2490_vm0, %v2491_v1 }
 0x412   : > { %2044 = vmatprep.subr.mxu1 %v2491_v1 }
 0x43c   : > { %v1006_v6 = vpop.xlane.xlu1 %1005 }
 0x43d   : > { %2199 = vrcp.f32 %v1006_v6 }
 0x440   : > { %v1234_v11 = vpop.permute.xlu1 %1233 }
 0x447   : > { %v2200_v7 = vpop.eup %2199 }
 0x481   : > { %v1080_v8 = vpop.f32.mrb[6].mxu1 }
 0x482   : > { %v1085_v9 = vmul.f32 %v2200_v7, %v1080_v8  ;;  %v2018_v10 = vpop.f32.mrb[7].mxu1 }
 0x484   : > { %2022 = vmatmul.mubr.msk.f32.vlgmr.msra.gmra.mrb[6].mxu0 %vm756_vm2, %v1085_v9 }
 0x485   : > { %2030 = vmatpush3.xpose.msk.msra.mxu0 %vm756_vm2, %v1236_v62  ;;  %2031 = vmatprep.mubr.msk.f32.mxu0 %vm2490_vm0, %v2491_v1 }
 0x486   : > { %2039 = vmatprep.subr.mxu0 %v2491_v1 }
 0x488   : > { %2032 = vmatmul.mubr.msk.f32.vlgmr.msra.gmra.mrb[8].mxu0 %vm756_vm2, %v1234_v11 }
 0x489   : > { %2041 = vmatprep.mubr.msk.f32.mxu0 %vm2490_vm0, %v2491_v1  ;;  %2040 = vmatpush3.msra.mxu0 %v1399_v28 }
 0x48a   : > { %2049 = vmatprep.subr.mxu0 %v2491_v1 }
 0x4e3   : > { %v1229_v12 = vpop.f32.mrb[8].mxu1 }
 0x4e4   : > { %v2028_v13 = vpop.f32.mrb[9].mxu1 }
 0x557   : > { %v1156_v14 = vpop.f32.mrb[6].mxu0 }
 0x558   : > { %v1230_v15 = vadd.f32 %v1229_v12, %v1156_v14  ;;  %v2023_v16 = vpop.f32.mrb[7].mxu0 }
 0x55b   : > { %v1307_v17 = vpop.f32.mrb[8].mxu0 }
 0x55c   : > { %v1311_v18 = vsel %vm755_vm3, %v1307_v17, -1e+30  ;;  %v2033_v19 = vpop.f32.mrb[9].mxu0 }
 0x55d   : > { %v1312_v20 = vsel %vm756_vm2, %v1311_v18, -inf }
 0x55e   : > { %1313 = vmax.xlane.f32.xlu1 %v1312_v20 }
 0x56f   : > { %1476 = vrot.lane.b32.xlu1 %v2873_v33, %s2494_s28 }
 0x5eb   : > { %v1314_v21 = vpop.xlane.xlu1 %1313 }
 0x5ec   : > { %v1315_v22 = vsub.f32 %v1311_v18, %v1314_v21 }
 0x5ee   : > { %v1316_v23 = vmul.f32 1.442695, %v1315_v22 }
 0x5ef   : > { %v1477_v25 = vpop.permute.xlu1 %1476 }
 0x5f0   : > { %2201 = vpow2.f32 %v1316_v23 }
 0x5fa   : > { %v2202_v24 = vpop.eup %2201 }
 0x5fb   : > { %2037 = vmatmul.mubr.msk.f32.vlgmr.msra.gmra.mrb[10].mxu1 %vm756_vm2, %v2202_v24  ;;  %v1318_v26 = vsel %vm756_vm2, %v2202_v24, 0.0 }
 0x5fc   : > { %2045 = vmatpush3.xpose.msk.msra.mxu1 %vm756_vm2, %v1477_v25  ;;  %1319 = vadd.xlane.f32.xlu0 %v1318_v26 }
 0x5fd   : > { %2046 = vmatprep.mubr.msk.f32.mxu1 %vm2490_vm0, %v2491_v1  ;;  %2054 = vmatprep.subr.mxu1 %v2491_v1 }
 0x5ff   : > { %2047 = vmatmul.mubr.msk.f32.vlgmr.msra.gmra.mrb[12].mxu1 %vm756_vm2, %v1475_v27 }
 0x600   : > { %2056 = vmatprep.mubr.msk.f32.mxu1 %vm2490_vm0, %v2491_v1 }
 0x612   : > { %1562 = vrot.lane.b32.xlu0 %v2880_v35, %s2494_s28 }
 0x689   : > { %v1320_v29 = vpop.xlane.xlu0 %1319 }
 0x68a   : > { %2203 = vrcp.f32 %v1320_v29 }
 0x68d   : > { %v1563_v34 = vpop.permute.xlu0 %1562 }
 0x694   : > { %v2204_v30 = vpop.eup %2203 }
 0x6ce   : > { %v1393_v31 = vpop.f32.mrb[10].mxu1 }
 0x6cf   : > { %v1398_v32 = vmul.f32 %v2204_v30, %v1393_v31  ;;  %v2038_v33 = vpop.f32.mrb[11].mxu1 }
 0x6d1   : > { %2042 = vmatmul.mubr.msk.f32.vlgmr.msra.gmra.mrb[10].mxu0 %vm756_vm2, %v1398_v32 }
 0x6d2   : > { %2050 = vmatpush3.msra.mxu0 %v1563_v34  ;;  %v1548_v36 = vpop.f32.mrb[12].mxu1  ;;  %2051 = vmatprep.mubr.msk.f32.mxu0 %vm2490_vm0, %v2491_v1  ;;  %v1640_v1 = vld [vmem:[#allocation13 + $0x18] sm:$0xff] }
 0x6d3   : > { %v1552_v35 = vsel %vm755_vm3, %v1548_v36, -1e+30  ;;  %v2048_v37 = vpop.f32.mrb[13].mxu1  ;;  %2055 = vmatpush3.msra.mxu1 %v1640_v1 }
 0x6d4   : > { %v1553_v38 = vsel %vm756_vm2, %v1552_v35, -inf }
 0x6d5   : > { %1554 = vmax.xlane.f32.xlu1 %v1553_v38 }
 0x762   : > { %v1555_v41 = vpop.xlane.xlu1 %1554 }
 0x763   : > { %v1556_v42 = vsub.f32 %v1552_v35, %v1555_v41 }
 0x765   : > { %v1557_v43 = vmul.f32 1.442695, %v1556_v42 }
 0x767   : > { %2205 = vpow2.f32 %v1557_v43 }
 0x771   : > { %v2206_v44 = vpop.eup %2205 }
 0x772   : > { %2052 = vmatmul.mubr.msk.f32.vlgmr.msra.gmra.mrb[12].mxu0 %vm756_vm2, %v2206_v44  ;;  %v1559_v45 = vsel %vm756_vm2, %v2206_v44, 0.0 }
 0x773   : > { %1560 = vadd.xlane.f32.xlu1 %v1559_v45 }
 0x7a4   : > { %v1469_v39 = vpop.f32.mrb[10].mxu0 }
 0x7a5   : > { %v1473_v40 = vadd.f32 %v1469_v39, %v1230_v15  ;;  %v2043_v46 = vpop.f32.mrb[11].mxu0 }
 0x800   : > { %v1561_v47 = vpop.xlane.xlu1 %1560 }
 0x801   : > { %2207 = vrcp.f32 %v1561_v47 }
 0x80b   : > { %v2208_v48 = vpop.eup %2207 }
 0x845   : > { %v1634_v49 = vpop.f32.mrb[12].mxu0 }
 0x846   : > { %v1639_v50 = vmul.f32 %v2208_v48, %v1634_v49  ;;  %v2053_v51 = vpop.f32.mrb[13].mxu0 }
 0x848   : > { %2057 = vmatmul.mubr.msk.f32.vlgmr.msra.gmra.mrb[14].mxu1 %vm756_vm2, %v1639_v50 }
 0x91b   : > { %v1710_v52 = vpop.f32.mrb[14].mxu1 }
 0x91c   : > { %v1714_v54 = vadd.f32 %v1710_v52, %v1473_v40  ;;  %v2058_v55 = vpop.f32.mrb[15].mxu1 }
 0x91e   : > { %v1722_v56 = vadd.f32 %v1922_v53, %v1714_v54 }
 0x920   : > { %1723 = vst.msk [vmem:[%s486_s9] sm:$0xff] %vm503_vm1, %v1722_v56 }
 0x921   : > { %2394 = shalt.err (!%p2391_p2)
}
 0x922   : > { %s2395_s3 = scalar_lea.hbm %s2971_s22, 128  ;;  %s2399_s25 = scalar_lea.hbm %s3071_s21, 256 }
 0x923   : > { %p2396_p10 = scmp.ne.s32.totalorder %s2971_s22, %s2395_s3  ;;  %p2400_p8 = scmp.lt.u32.totalorder %s2971_s22, %s3071_s21 }
 0x924   : > { %p2401_p3 = scmp.lt.u32.totalorder %s2399_s25, %s2395_s3  ;;  %p2403_p6 = scmp.lt.u32.totalorder %s2395_s3, %s2971_s22 }
 0x925   : > { %p2397_p1 = pnand %p2396_p10, %p3072_p13 }
 0x926   : > { %p2402_p12 = por %p2401_p3, %p2400_p8 }
 0x927   : > { %p2398_p5 = pneg %p2397_p1 }
 0x928   : > { %p2404_p4 = por %p2403_p6, %p2402_p12 }
 0x92a   : > { %p2405_p9 = pnand %p2404_p4, %p2398_p5 }
 0x92c   : > { %2408 = shalt.err (!%p2405_p9)
}
 0x92d   : > { %2097 = dma.vmem_to_hbm [thread:$0]  (%p3072_p13), %s2973_s27, 128, %s2971_s22, %s1725_s24  }
 0x92e PF: > { %s1751_s5 = sand.u32 1, %s2459_s13   ;;  %p3073_p0 = scmp.ne.s32.totalorder %s3058_s12, 0 }
 0x92f   : > { %p3074_p7 = scmp.ge.s32.totalorder %s2479_s18, 2  ;;  %s1752_s20 = scalar_lea.sflag [#allocation6], %s1751_s5 }
 0x931   : > { %p2120_p11 = pnand %p3074_p7, %p3073_p0 }
 0x933   : > { %2454 = dma.done.wait (!%p2120_p11), %s1752_s20, 128  }
 0x934   : > { %2456 = vsyncadd (!%p2120_p11), %s1752_s20, 4294967168  ;;  %s31_s18 = sadd.s32 1, %s2479_s18   ;;  %s3075_s10 = sld [smem:[#allocation23_spill]] }
 0x935   : > { %p28_p2 = scmp.ge.s32.totalorder %s31_s18, 4   ;;  %s3076_s13 = smov %s2463_s14 }
 0x936   : > { %s3077_s14 = smov %s2467_s15  ;;  %s3078_s15 = smov %s2735_s11 }
 0x937   : > { %s3079_s16 = smov %s2475_s17  ;;  %30 = sbr.rel (!%p28_p2) target bundleno = 18 (0x12), region = 138 }
 0x93a   : > { %s3080_s17 = smov %s3075_s10 }
 0x93e   :  { %1757 = vsyncpa [#allocation5], 1 }
 0x93f   :  { %1759 = vsyncpa [#allocation5 + $0x1], 1 }
 0x940   :  { %1760 = vsyncpa [#allocation8], 1 }
 0x941   :  { %1762 = vsyncpa [#allocation8 + $0x1], 1 }
 0x942   :  { %1763 = vsyncpa [#allocation11], 1 }
 0x943   :  { %1764 = vsyncpa [#allocation14], 1 }
 0x944   :  { %1765 = vsyncpa [#allocation6], 1 }
 0x945   :  { %1767 = vsyncpa [#allocation6 + $0x1], 1 }

</bundles_post_ra>
